<compile_context>
chip_gen: v6e
topology: v6e:2x2x1
jax: 0.10.0
libtpu: 0.0.40
codegen_flags: <defaults>
</compile_context>

<pallas_src>
import functools

import jax
import jax.numpy as jnp
from jax.experimental import pallas as pl
from jax.experimental.pallas import tpu as pltpu

BN_EPS = 1e-5
LANE = 128
VMEM_LIMIT = 48 * 1024 * 1024          # > default scoped limit everywhere, < v7x physical 64 MiB
P_RESIDENT_MAX_BYTES = 16 * 1024 * 1024  # budget for keeping P resident (incl. 2x buffering)


def _round_up(x, m):
    return ((x + m - 1) // m) * m


def _tile_plan(n):
    # Review: drop the 256 tier, 512 floor once padded N >= 512, 1024 for big graphs
    # (amortize per-grid-step overhead; >=2 row blocks for v7x megacore when n > 512).
    n128 = _round_up(max(n, 1), LANE)
    if n128 <= 512:
        t = n128
    elif n128 <= 4096:
        t = 512
    else:
        t = 1024
    return t, t


# ----------------------------- kernels ---------------------------------------


def _transform_kernel(x_ref, w_ref, o_ref):
    # o = x @ w   (row tile, f32 accumulate, bf16 out)
    o_ref[...] = jnp.dot(
        x_ref[...], w_ref[...], preferred_element_type=jnp.float32
    ).astype(o_ref.dtype)


def _agg_relu_project_kernel(a_ref, p_ref, b_ref, w_ref, o_ref, acc_ref, *, tk, p_resident):
    # out = relu(A @ P + b) @ W   (layer-1 aggregation fused with layer-2 transform)
    k = pl.program_id(1)

    @pl.when(k == 0)
    def _():
        acc_ref[...] = jnp.zeros_like(acc_ref)

    if p_resident:
        # P is resident in VMEM (fetched once); slice the k-chunk locally.
        p_blk = p_ref[pl.ds(pl.multiple_of(k * tk, tk), tk), :]
    else:
        p_blk = p_ref[...]
    acc_ref[...] += jnp.dot(a_ref[...], p_blk, preferred_element_type=jnp.float32)

    @pl.when(k == pl.num_programs(1) - 1)
    def _():
        h = jnp.maximum(acc_ref[...] + b_ref[...], 0.0)
        o_ref[...] = jnp.dot(
            h.astype(w_ref.dtype), w_ref[...], preferred_element_type=jnp.float32
        ).astype(o_ref.dtype)


def _agg_bias_kernel(a_ref, p_ref, b_ref, o_ref, acc_ref, *, tk, p_resident):
    # out = A @ P + b   (layer-2 aggregation)
    k = pl.program_id(1)

    @pl.when(k == 0)
    def _():
        acc_ref[...] = jnp.zeros_like(acc_ref)

    if p_resident:
        p_blk = p_ref[pl.ds(pl.multiple_of(k * tk, tk), tk), :]
    else:
        p_blk = p_ref[...]
    acc_ref[...] += jnp.dot(a_ref[...], p_blk, preferred_element_type=jnp.float32)

    @pl.when(k == pl.num_programs(1) - 1)
    def _():
        o_ref[...] = (acc_ref[...] + b_ref[...]).astype(o_ref.dtype)


# --------------------------- pallas_call wrappers -----------------------------


def _transform(x, w, tm):
    n, cin = x.shape
    cout = w.shape[1]
    return pl.pallas_call(
        _transform_kernel,
        out_shape=jax.ShapeDtypeStruct((n, cout), jnp.bfloat16),
        grid_spec=pltpu.PrefetchScalarGridSpec(
            num_scalar_prefetch=0,
            grid=(n // tm,),
            in_specs=[
                pl.BlockSpec((tm, cin), lambda i: (i, 0)),
                pl.BlockSpec((cin, cout), lambda i: (0, 0)),
            ],
            out_specs=pl.BlockSpec((tm, cout), lambda i: (i, 0)),
        ),
        compiler_params=pltpu.CompilerParams(
            dimension_semantics=("parallel",),
            vmem_limit_bytes=VMEM_LIMIT,
        ),
    )(x, w)


def _p_spec(npad, c, tk, p_resident):
    if p_resident:
        # full array, constant block index -> DMA'd once, stays in VMEM
        return pl.BlockSpec((npad, c), lambda i, k: (0, 0))
    return pl.BlockSpec((tk, c), lambda i, k: (k, 0))


def _aggregate_relu_project(a, p, b, w, tm, tk, p_resident):
    npad = a.shape[0]
    c1 = p.shape[1]
    c2 = w.shape[1]
    kernel = functools.partial(_agg_relu_project_kernel, tk=tk, p_resident=p_resident)
    # TODO(synk): try pipeline_mode=pl.Buffered(3) on the A BlockSpec (few-% win,
    # keeps the HBM stream saturated between grid steps).
    return pl.pallas_call(
        kernel,
        out_shape=jax.ShapeDtypeStruct((npad, c2), jnp.bfloat16),
        grid_spec=pltpu.PrefetchScalarGridSpec(
            num_scalar_prefetch=0,
            grid=(npad // tm, npad // tk),
            in_specs=[
                pl.BlockSpec((tm, tk), lambda i, k: (i, k)),
                _p_spec(npad, c1, tk, p_resident),
                pl.BlockSpec((1, c1), lambda i, k: (0, 0)),
                pl.BlockSpec((c1, c2), lambda i, k: (0, 0)),
            ],
            out_specs=pl.BlockSpec((tm, c2), lambda i, k: (i, 0)),
            scratch_shapes=[pltpu.VMEM((tm, c1), jnp.float32)],
        ),
        compiler_params=pltpu.CompilerParams(
            dimension_semantics=("parallel", "arbitrary"),
            vmem_limit_bytes=VMEM_LIMIT,
        ),
    )(a, p, b, w)


def _aggregate_bias(a, p, b, tm, tk, p_resident):
    npad = a.shape[0]
    c = p.shape[1]
    kernel = functools.partial(_agg_bias_kernel, tk=tk, p_resident=p_resident)
    return pl.pallas_call(
        kernel,
        out_shape=jax.ShapeDtypeStruct((npad, c), jnp.float32),
        grid_spec=pltpu.PrefetchScalarGridSpec(
            num_scalar_prefetch=0,
            grid=(npad // tm, npad // tk),
            in_specs=[
                pl.BlockSpec((tm, tk), lambda i, k: (i, k)),
                _p_spec(npad, c, tk, p_resident),
                pl.BlockSpec((1, c), lambda i, k: (0, 0)),
            ],
            out_specs=pl.BlockSpec((tm, c), lambda i, k: (i, 0)),
            scratch_shapes=[pltpu.VMEM((tm, c), jnp.float32)],
        ),
        compiler_params=pltpu.CompilerParams(
            dimension_semantics=("parallel", "arbitrary"),
            vmem_limit_bytes=VMEM_LIMIT,
        ),
    )(a, p, b)


# ------------------------------ host wrapper ----------------------------------


def precompute_gcn_inputs(x, edge_index, params):
    """Per-graph XLA glue: padded normalized adjacency + BN-folded, padded weights.

    Hoist this out of the hot loop and reuse its result across forward calls on
    the same graph; only gcn_net_apply() runs per call.
    """
    n, cin = x.shape
    hidden = params["w1"].shape[1]
    out_channels = params["w2"].shape[1]

    tm, tk = _tile_plan(n)
    npad = _round_up(n, tm)
    cinp = _round_up(cin, LANE)
    hp = _round_up(hidden, LANE)
    cop = _round_up(out_channels, LANE)

    # ---- dense normalized adjacency, built directly at padded size ----
    # A_hat = D^-1/2 (A + I) D^-1/2 ; padded rows/cols stay zero (deg 0 -> 0).
    # TODO(synk): for large sparse graphs replace the dense N^2 A_hat stream with a
    # CSR / blocked aggregation (row-pointer + column-block indices via scalar
    # prefetch, skipping all-zero A blocks); optionally narrow A_hat to fp8 (v7x)
    # or int8 (v5e/v6e) after an accuracy check — values are in (0, 1].
    adj = jnp.zeros((npad, npad), dtype=jnp.float32)
    if edge_index.shape[1] > 0:
        adj = adj.at[edge_index[0], edge_index[1]].add(1.0)  # duplicates counted (PyG-like)
    idx = jnp.arange(n)
    adj = adj.at[idx, idx].add(1.0)                          # self-loops on real nodes only
    deg = jnp.sum(adj, axis=1)
    d_inv_sqrt = jnp.where(deg > 0, jax.lax.rsqrt(deg), 0.0)
    a_p = (adj * d_inv_sqrt[:, None] * d_inv_sqrt[None, :]).astype(jnp.bfloat16)

    # ---- fold eval-mode BatchNorm into the conv weights / biases ----
    s1 = params["bn1_gamma"] * jax.lax.rsqrt(params["bn1_var"] + BN_EPS)   # [1, H]
    w1f = params["w1"] * s1                                                # [Cin, H]
    b1f = (params["b1"] - params["bn1_mean"]) * s1 + params["bn1_beta"]    # [1, H]
    s2 = params["bn2_gamma"] * jax.lax.rsqrt(params["bn2_var"] + BN_EPS)
    w2f = params["w2"] * s2
    b2f = (params["b2"] - params["bn2_mean"]) * s2 + params["bn2_beta"]

    def pad2(m, rows, cols, dtype):
        out = jnp.zeros((rows, cols), dtype)
        return out.at[: m.shape[0], : m.shape[1]].set(m.astype(dtype))

    return {
        "n": n, "out_channels": out_channels,
        "tm": tm, "tk": tk, "npad": npad,
        "a": a_p,
        "x": pad2(x, npad, cinp, jnp.bfloat16),
        "w1": pad2(w1f, cinp, hp, jnp.bfloat16),
        "b1": pad2(b1f, 1, hp, jnp.float32),
        "w2": pad2(w2f, hp, cop, jnp.bfloat16),
        "b2": pad2(b2f, 1, cop, jnp.float32),
    }


def gcn_net_apply(prep):
    tm, tk, npad = prep["tm"], prep["tk"], prep["npad"]
    a_p, x_p = prep["a"], prep["x"]
    w1_p, b1_p, w2_p, b2_p = prep["w1"], prep["b1"], prep["w2"], prep["b2"]
    hp = w1_p.shape[1]
    cop = w2_p.shape[1]

    # Keep P resident in VMEM (single DMA) when 2x its bf16 size fits the budget;
    # otherwise fall back to re-streaming (tk, c) blocks per row band.
    p_resident = 2 * npad * max(hp, cop) * 2 <= P_RESIDENT_MAX_BYTES

    # P1 = X @ W1'
    if npad // tm == 1:
        # single row tile: a separate pallas_call would be pure launch/HBM overhead
        p1 = jnp.dot(x_p, w1_p, preferred_element_type=jnp.float32).astype(jnp.bfloat16)
    else:
        p1 = _transform(x_p, w1_p, tm)

    # P2 = relu(A @ P1 + b1') @ W2'
    p2 = _aggregate_relu_project(a_p, p1, b1_p, w2_p, tm, tk, p_resident)
    # Z = A @ P2 + b2'
    z = _aggregate_bias(a_p, p2, b2_p, tm, tk, p_resident)

    # padded rows/cols carry garbage (relu(b1')@W2' + b2'); this slice is load-bearing
    return z[: prep["n"], : prep["out_channels"]]


def gcn_net_forward(x, edge_index, params):
    """Forward pass of `Net` (GCNEncoder) for a single graph (eval mode).

    x:          [N, C_in] float32 node features
    edge_index: [2, E] int32 edge list (directed pairs, as in PyG)
    params:     dict of weights (see init_params)
    """
    return gcn_net_apply(precompute_gcn_inputs(x, edge_index, params))


def init_params(key, in_channels, out_channels):
    """Deterministic synthetic parameters matching GCNEncoder(in_channels, out_channels)."""
    hidden = 2 * out_channels
    k = jax.random.split(key, 8)

    def row(v):  # per-channel params as [1, C] rows (lane-major)
        return v.reshape(1, -1).astype(jnp.float32)

    return {
        # GCNConv 1: in_channels -> 2*out_channels
        "w1": (jax.random.normal(k[0], (in_channels, hidden)) * 0.1).astype(jnp.float32),
        "b1": row(jax.random.normal(k[1], (hidden,)) * 0.05),
        "bn1_gamma": row(1.0 + 0.1 * jax.random.normal(k[2], (hidden,))),
        "bn1_beta": row(0.05 * jax.random.normal(k[3], (hidden,))),
        "bn1_mean": row(0.1 * jax.random.normal(k[4], (hidden,))),
        "bn1_var": row(1.0 + 0.1 * jax.random.uniform(k[5], (hidden,))),
        # GCNConv 2: 2*out_channels -> out_channels
        "w2": (jax.random.normal(k[6], (hidden, out_channels)) * 0.1).astype(jnp.float32),
        "b2": row(jax.random.normal(k[7], (out_channels,)) * 0.05),
        "bn2_gamma": row(jnp.ones((out_channels,))),
        "bn2_beta": row(jnp.zeros((out_channels,))),
        "bn2_mean": row(jnp.zeros((out_channels,))),
        "bn2_var": row(jnp.ones((out_channels,))),
    }


if __name__ == "__main__":
    key = jax.random.PRNGKey(0)
    k_x, k_p = jax.random.split(key)

    N = 16              # nodes
    IN_CHANNELS = 8
    OUT_CHANNELS = 4    # encoder output dim (hidden = 8)

    # deterministic node features
    x = jax.random.normal(k_x, (N, IN_CHANNELS), dtype=jnp.float32)

    # small deterministic ring graph (both directions), as edge_index [2, E]
    src = jnp.arange(N, dtype=jnp.int32)
    dst = (src + 1) % N
    edge_index = jnp.stack([jnp.concatenate([src, dst]),
                            jnp.concatenate([dst, src])], axis=0)

    params = init_params(k_p, IN_CHANNELS, OUT_CHANNELS)

    z = gcn_net_forward(x, edge_index, params)
    jax.block_until_ready(z)

    assert z.shape == (N, OUT_CHANNELS) and z.dtype == jnp.float32
    assert bool(jnp.all(jnp.isfinite(z)))
    print("KERNEL_OK")
</pallas_src>

<mosaic_0001>
module attributes {stable_mosaic.version = 11 : i64} {
  func.func @_agg_relu_project_kernel(%arg0: i32, %arg1: i32, %arg2: memref<128x128xbf16, #tpu.memory_space<vmem>>, %arg3: memref<128x128xbf16, #tpu.memory_space<vmem>>, %arg4: memref<1x128xf32, #tpu.memory_space<vmem>>, %arg5: memref<128x128xbf16, #tpu.memory_space<vmem>>, %arg6: memref<128x128xbf16, #tpu.memory_space<vmem>>, %arg7: memref<128x128xf32, #tpu.memory_space<vmem>>) attributes {dimension_semantics = [#tpu.dimension_semantics<parallel>, #tpu.dimension_semantics<arbitrary>], iteration_bounds = array<i64: 1, 1>, scalar_prefetch = 0 : i64, scratch_operands = 1 : i64, tpu.core_type = #tpu.core_type<tc>, window_params = [{transform_indices = @transform_0, window_bounds = array<i64: 128, 128>}, {pipeline_mode = #tpu.pipeline_mode<synchronous>, transform_indices = @transform_1, window_bounds = array<i64: 128, 128>}, {pipeline_mode = #tpu.pipeline_mode<synchronous>, transform_indices = @transform_2, window_bounds = array<i64: 1, 128>}, {pipeline_mode = #tpu.pipeline_mode<synchronous>, transform_indices = @transform_3, window_bounds = array<i64: 128, 128>}, {transform_indices = @transform_4, window_bounds = array<i64: 128, 128>}]} {
    %c0_i32 = arith.constant 0 : i32
    %0 = arith.cmpi eq, %arg1, %c0_i32 : i32
    %1 = arith.extui %0 : i1 to i32
    %c0_i32_0 = arith.constant 0 : i32
    %2 = arith.cmpi ne, %1, %c0_i32_0 : i32
    scf.if %2 {
      %cst_9 = arith.constant 0.000000e+00 : f32
      %15 = vector.broadcast %cst_9 : f32 to vector<128x128xf32>
      %c0_10 = arith.constant 0 : index
      %c0_11 = arith.constant 0 : index
      %16 = vector.load %arg7[%c0_10, %c0_11] : memref<128x128xf32, #tpu.memory_space<vmem>>, vector<128x128xf32>
      tpu.vector_store %arg7[%c0_10, %c0_11], %15 {strides = array<i32>} : memref<128x128xf32, #tpu.memory_space<vmem>>, vector<128x128xf32>,
    } else {
    }
    %c128_i32 = arith.constant 128 : i32
    %3 = arith.muli %arg1, %c128_i32 : i32
    %4 = tpu.assume_multiple %3, 128 : i32
    %5 = arith.index_cast %4 : i32 to index
    %c0 = arith.constant 0 : index
    %6 = vector.load %arg3[%5, %c0] : memref<128x128xbf16, #tpu.memory_space<vmem>>, vector<128x128xbf16>
    %c0_1 = arith.constant 0 : index
    %c0_2 = arith.constant 0 : index
    %7 = vector.load %arg7[%c0_1, %c0_2] : memref<128x128xf32, #tpu.memory_space<vmem>>, vector<128x128xf32>
    %c0_3 = arith.constant 0 : index
    %c0_4 = arith.constant 0 : index
    %8 = vector.load %arg2[%c0_3, %c0_4] : memref<128x128xbf16, #tpu.memory_space<vmem>>, vector<128x128xbf16>
    %cst = arith.constant dense<0.000000e+00> : vector<128x128xf32>
    %9 = tpu.matmul %8, %6, %cst {dimension_numbers = #tpu.dot_dimension_numbers<[1], [0], [0], [1], [0, 0, 1, 1], [], []>} : vector<128x128xbf16>, vector<128x128xbf16>, vector<128x128xf32> -> vector<128x128xf32>
    %10 = arith.addf %7, %9 : vector<128x128xf32>
    %c0_5 = arith.constant 0 : index
    %c0_6 = arith.constant 0 : index
    %11 = vector.load %arg7[%c0_5, %c0_6] : memref<128x128xf32, #tpu.memory_space<vmem>>, vector<128x128xf32>
    tpu.vector_store %arg7[%c0_5, %c0_6], %10 {strides = array<i32>} : memref<128x128xf32, #tpu.memory_space<vmem>>, vector<128x128xf32>,
    %c0_i32_7 = arith.constant 0 : i32
    %12 = arith.cmpi eq, %arg1, %c0_i32_7 : i32
    %13 = arith.extui %12 : i1 to i32
    %c0_i32_8 = arith.constant 0 : i32
    %14 = arith.cmpi ne, %13, %c0_i32_8 : i32
    scf.if %14 {
      %c0_9 = arith.constant 0 : index
      %c0_10 = arith.constant 0 : index
      %15 = vector.load %arg7[%c0_9, %c0_10] : memref<128x128xf32, #tpu.memory_space<vmem>>, vector<128x128xf32>
      %c0_11 = arith.constant 0 : index
      %c0_12 = arith.constant 0 : index
      %16 = vector.load %arg4[%c0_11, %c0_12] : memref<1x128xf32, #tpu.memory_space<vmem>>, vector<1x128xf32>
      %17 = vector.broadcast %16 : vector<1x128xf32> to vector<128x128xf32>
      %18 = arith.addf %15, %17 : vector<128x128xf32>
      %cst_13 = arith.constant 0.000000e+00 : f32
      %19 = vector.broadcast %cst_13 : f32 to vector<128x128xf32>
      %20 = arith.maximumf %18, %19 : vector<128x128xf32>
      %21 = arith.truncf %20 : vector<128x128xf32> to vector<128x128xbf16>
      %c0_14 = arith.constant 0 : index
      %c0_15 = arith.constant 0 : index
      %22 = vector.load %arg5[%c0_14, %c0_15] : memref<128x128xbf16, #tpu.memory_space<vmem>>, vector<128x128xbf16>
      %cst_16 = arith.constant dense<0.000000e+00> : vector<128x128xf32>
      %23 = tpu.matmul %21, %22, %cst_16 {dimension_numbers = #tpu.dot_dimension_numbers<[1], [0], [0], [1], [0, 0, 1, 1], [], []>} : vector<128x128xbf16>, vector<128x128xbf16>, vector<128x128xf32> -> vector<128x128xf32>
      %24 = arith.truncf %23 : vector<128x128xf32> to vector<128x128xbf16>
      %c0_17 = arith.constant 0 : index
      %c0_18 = arith.constant 0 : index
      %25 = vector.load %arg6[%c0_17, %c0_18] : memref<128x128xbf16, #tpu.memory_space<vmem>>, vector<128x128xbf16>
      tpu.vector_store %arg6[%c0_17, %c0_18], %24 {strides = array<i32>} : memref<128x128xbf16, #tpu.memory_space<vmem>>, vector<128x128xbf16>,
    } else {
    }
    return
  }
  func.func @transform_0(%arg0: i32, %arg1: i32) -> (i32, i32) {
    %c0_i32 = arith.constant 0 : i32
    return %arg0, %arg1 : i32, i32
  }
  func.func @transform_1(%arg0: i32, %arg1: i32) -> (i32, i32) {
    %c0_i32 = arith.constant 0 : i32
    %c0_i32_0 = arith.constant 0 : i32
    %c0_i32_1 = arith.constant 0 : i32
    return %c0_i32, %c0_i32_0 : i32, i32
  }
  func.func @transform_2(%arg0: i32, %arg1: i32) -> (i32, i32) {
    %c0_i32 = arith.constant 0 : i32
    %c0_i32_0 = arith.constant 0 : i32
    %c0_i32_1 = arith.constant 0 : i32
    return %c0_i32, %c0_i32_0 : i32, i32
  }
  func.func @transform_3(%arg0: i32, %arg1: i32) -> (i32, i32) {
    %c0_i32 = arith.constant 0 : i32
    %c0_i32_0 = arith.constant 0 : i32
    %c0_i32_1 = arith.constant 0 : i32
    return %c0_i32, %c0_i32_0 : i32, i32
  }
  func.func @transform_4(%arg0: i32, %arg1: i32) -> (i32, i32) {
    %c0_i32 = arith.constant 0 : i32
    %c0_i32_0 = arith.constant 0 : i32
    return %arg0, %c0_i32 : i32, i32
  }
}

</mosaic_0001>

<bundles_post_ra>
// kernel: tpu_custom_call.1
= control target key start
LH: loop header
LB: loop body
LE: loop exit
PB: predicated region body
PF: predicated region fallthrough
CT: control target
= control target key end

     0   :  { %9 = vsyncpa [#allocation4], 0  ;;  %s1059_s0 = inlined_call_operand.hbm [shape: bf16[128,128], index: 0, kind: input, shape index: {}]   ;;  %s1060_s1 = inlined_call_operand.hbm [shape: bf16[128,128], index: 1, kind: input, shape index: {}]   ;;  %s1061_s2 = inlined_call_operand.vmem [shape: f32[1,128], index: 2, kind: input, shape index: {}]   ;;  %s1062_s3 = inlined_call_operand.hbm [shape: bf16[128,128], index: 3, kind: input, shape index: {}]   ;;  %s1063_s4 = inlined_call_operand.hbm [shape: bf16[128,128], index: 4, kind: output, shape index: {}]  }
   0x1   :  { %10 = vsyncpa [#allocation7], 0 }
   0x2   :  { %11 = vsyncpa [#allocation5], 0  ;;  %s1001_s15 = smov [#allocation6]   ;;  %s1002_s17 = smov [#allocation3]  }
   0x3   :  { %s29_s16 = sshll.u32 %s1001_s15, 4  ;;  %s17_s18 = sshll.u32 %s1002_s17, 4  ;;  %s30_s16 = int_to_ptr.vmem [resolvable:$true] %s29_s16  ;;  %s18_s18 = int_to_ptr.vmem [resolvable:$true] %s17_s18 }
   0x4   :  { %s923_s19 = scalar_lea.vmem %s30_s16, 1024  ;;  %p928_p1 = scmp.lt.s32.totalorder %s30_s16, %s30_s16 }
   0x5   :  { %p924_p0 = scmp.ne.s32.totalorder %s30_s16, %s923_s19  ;;  %p929_p2 = scmp.lt.s32.totalorder %s923_s19, %s923_s19 }
   0x7   :  { %p930_p3 = por %p929_p2, %p928_p1 }
   0x9   :  { %p931_p4 = pnand %p930_p3, %p924_p0 }
   0xb   :  { %934 = shalt.err (!%p931_p4)
}
   0xc   :  { %s1003_s20 = smov 64   ;;  %s1004_s21 = smov 4  }
   0xd   :  { %35 = dma.hbm_to_vmem [thread:$0]  %s1060_s1, 1024, %s30_s16, [#allocation7], %s1003_s20, %s1003_s20, %s1004_s21  }
   0xe   :  { %s943_s24 = scalar_lea.vmem %s18_s18, 1024  ;;  %p948_p6 = scmp.lt.s32.totalorder %s18_s18, %s18_s18 }
   0xf   :  { %p944_p5 = scmp.ne.s32.totalorder %s18_s18, %s943_s24  ;;  %p949_p7 = scmp.lt.s32.totalorder %s943_s24, %s943_s24 }
  0x11   :  { %p950_p8 = por %p949_p7, %p948_p6 }
  0x13   :  { %p951_p9 = pnand %p950_p8, %p944_p5 }
  0x15   :  { %954 = shalt.err (!%p951_p9)
}
  0x16   :  { %23 = dma.hbm_to_vmem [thread:$0]  %s1059_s0, 1024, %s18_s18, [#allocation4], %s1003_s20, %s1003_s20, %s1004_s21  }
  0x17   :  { %s1005_s27 = smov [#allocation8]  }
  0x18   :  { %s43_s28 = sshll.u32 %s1005_s27, 4  ;;  %s44_s28 = int_to_ptr.vmem [resolvable:$true] %s43_s28 }
  0x19   :  { %s963_s29 = scalar_lea.vmem %s44_s28, 1024  ;;  %p968_p11 = scmp.lt.s32.totalorder %s44_s28, %s44_s28 }
  0x1a   :  { %p964_p10 = scmp.ne.s32.totalorder %s44_s28, %s963_s29  ;;  %p969_p12 = scmp.lt.s32.totalorder %s963_s29, %s963_s29 }
  0x1c   :  { %p970_p13 = por %p969_p12, %p968_p11 }
  0x1e   :  { %p971_p0 = pnand %p970_p13, %p964_p10 }
  0x20   :  { %974 = shalt.err (!%p971_p0)
}
  0x21   :  { %49 = dma.hbm_to_vmem [thread:$0]  %s1062_s3, 1024, %s44_s28, [#allocation7], %s1003_s20, %s1003_s20, %s1004_s21  }
  0x22   :  { %995 = dma.done.wait [#allocation4], 1024  }
  0x23   :  { %996 = vsyncadd [#allocation4], 4294966272 }
  0x24   :  { %997 = dma.done.wait [#allocation7], 2048  }
  0x25   :  { %998 = vsyncadd [#allocation7], 4294965248  ;;  %v891_v0 = vld [vmem:[#allocation6 + $0x38] sm:$0xff]   ;;  %v892_v1 = vld [vmem:[#allocation6 + $0x30] sm:$0xff]  }
  0x26   :  { %821 = vmatprep.subr.bf16.mxu0 %v891_v0  ;;  %v893_v2 = vld [vmem:[#allocation6 + $0x28] sm:$0xff]   ;;  %v894_v3 = vld [vmem:[#allocation6 + $0x20] sm:$0xff]   ;;  %v895_v5 = vld [vmem:[#allocation6 + $0x18] sm:$0xff]  }
  0x27   :  { %822 = vmatpush3.bf16.msra.mxu0 %v891_v0  ;;  %v899_v4 = vld [vmem:[#allocation3] sm:$0xff]   ;;  %v896_v6 = vld [vmem:[#allocation6 + $0x10] sm:$0xff]   ;;  %v907_v7 = vld [vmem:[#allocation8 + $0x38] sm:$0xff]  }
  0x28   :  { %823 = vmatprep.subr.bf16.mxu0 %v892_v1  ;;  %837 = vmatprep.mubr.bf16.mxu0 %v899_v4  ;;  %v908_v8 = vld [vmem:[#allocation8 + $0x30] sm:$0xff]   ;;  %v897_v9 = vld [vmem:[#allocation6 + $0x8] sm:$0xff]   ;;  %v898_v11 = vld [vmem:[#allocation6] sm:$0xff]  }
  0x29   :  { %853 = vmatprep.subr.bf16.mxu1 %v907_v7  ;;  %v909_v10 = vld [vmem:[#allocation8 + $0x28] sm:$0xff]   ;;  %v910_v12 = vld [vmem:[#allocation8 + $0x20] sm:$0xff]   ;;  %v911_v13 = vld [vmem:[#allocation8 + $0x18] sm:$0xff]  }
  0x2a   :  { %854 = vmatpush3.bf16.msra.mxu1 %v907_v7  ;;  %v900_v14 = vld [vmem:[#allocation3 + $0x8] sm:$0xff]   ;;  %v901_v15 = vld [vmem:[#allocation3 + $0x10] sm:$0xff]   ;;  %v902_v16 = vld [vmem:[#allocation3 + $0x18] sm:$0xff]  }
  0x2b   :  { %824 = vmatpush3.bf16.msra.mxu0 %v892_v1  ;;  %855 = vmatprep.subr.bf16.mxu1 %v908_v8  ;;  %v903_v17 = vld [vmem:[#allocation3 + $0x20] sm:$0xff]   ;;  %v904_v18 = vld [vmem:[#allocation3 + $0x28] sm:$0xff]   ;;  %v905_v19 = vld [vmem:[#allocation3 + $0x30] sm:$0xff]  }
  0x2c   :  { %825 = vmatprep.subr.bf16.mxu0 %v893_v2  ;;  %v906_v20 = vld [vmem:[#allocation3 + $0x38] sm:$0xff]   ;;  %v912_v21 = vld [vmem:[#allocation8 + $0x10] sm:$0xff]   ;;  %v913_v22 = vld [vmem:[#allocation8 + $0x8] sm:$0xff]  }
  0x2d   :  { %v914_v23 = vld [vmem:[#allocation8] sm:$0xff]  }
  0x2e   :  { %856 = vmatpush3.bf16.msra.mxu1 %v908_v8  ;;  %v701_v26 = vld [vmem:[%s1061_s2] ss:$0 sm:$0xff]  ;;  %s1006_s2 = smov [#allocation9]  }
  0x2f   :  { %826 = vmatpush3.bf16.msra.mxu0 %v893_v2  ;;  %857 = vmatprep.subr.bf16.mxu1 %v909_v10  ;;  %s670_s5 = sshll.u32 %s1006_s2, 4  ;;  %s671_s5 = int_to_ptr.vmem [resolvable:$true] %s670_s5 }
  0x30   :  { %827 = vmatprep.subr.bf16.mxu0 %v894_v3  ;;  %s975_s6 = scalar_lea.vmem %s671_s5, 1024  ;;  %p980_p2 = scmp.lt.s32.totalorder %s671_s5, %s671_s5 }
  0x31   :  { %p976_p1 = scmp.ne.s32.totalorder %s671_s5, %s975_s6  ;;  %p981_p3 = scmp.lt.s32.totalorder %s975_s6, %s975_s6 }
  0x32   :  { %858 = vmatpush3.bf16.msra.mxu1 %v909_v10 }
  0x33   :  { %828 = vmatpush3.bf16.msra.mxu0 %v894_v3  ;;  %859 = vmatprep.subr.bf16.mxu1 %v910_v12  ;;  %p982_p4 = por %p981_p3, %p980_p2 }
  0x34   :  { %829 = vmatprep.subr.bf16.mxu0 %v895_v5 }
  0x35   :  { %p983_p5 = pnand %p982_p4, %p976_p1 }
  0x36   :  { %860 = vmatpush3.bf16.msra.mxu1 %v910_v12 }
  0x37   :  { %830 = vmatpush3.bf16.msra.mxu0 %v895_v5  ;;  %861 = vmatprep.subr.bf16.mxu1 %v911_v13 }
  0x38   :  { %831 = vmatprep.subr.bf16.mxu0 %v896_v6 }
  0x3a   :  { %862 = vmatpush3.bf16.msra.mxu1 %v911_v13 }
  0x3b   :  { %832 = vmatpush3.bf16.msra.mxu0 %v896_v6  ;;  %863 = vmatprep.subr.bf16.mxu1 %v912_v21 }
  0x3c   :  { %833 = vmatprep.subr.bf16.mxu0 %v897_v9 }
  0x3e   :  { %864 = vmatpush3.bf16.msra.mxu1 %v912_v21 }
  0x3f   :  { %834 = vmatpush3.bf16.msra.mxu0 %v897_v9  ;;  %865 = vmatprep.subr.bf16.mxu1 %v913_v22 }
  0x40   :  { %835 = vmatprep.subr.bf16.mxu0 %v898_v11 }
  0x42   :  { %866 = vmatpush3.bf16.msra.mxu1 %v913_v22 }
  0x43   :  { %836 = vmatpush3.bf16.msra.mxu0 %v898_v11  ;;  %867 = vmatprep.subr.bf16.mxu1 %v914_v23 }
  0x46   :  { %838 = vmatmul.mubr.bf16.vlgmr.msra.gmra.mxu0 %v900_v14  ;;  %868 = vmatpush3.bf16.msra.mxu1 %v914_v23 }
  0x47   :  { %841 = vmatprep.mubr.bf16.mxu0 %v901_v15 }
  0x4e   :  { %842 = vmatmul.mubr.bf16.gmra.mxu0 %v902_v16 }
  0x4f   :  { %845 = vmatprep.mubr.bf16.mxu0 %v903_v17 }
  0x56   :  { %846 = vmatmul.mubr.bf16.gmra.mxu0 %v904_v18 }
  0x57   :  { %849 = vmatprep.mubr.bf16.mxu0 %v905_v19 }
  0x5e   :  { %850 = vmatmul.mubr.bf16.gmra.mxu0 %v906_v20 }
 0x106   :  { %v839_v24 = vpop.f32.mrf.mxu0 }
 0x107   :  { %v386_v30 = vadd.f32 %v839_v24, %v701_v26 }
 0x108   :  { %v263_v25 = vpop.f32.mrf.mxu0 }
 0x109   :  { %v384_v28 = vadd.f32 %v701_v26, %v263_v25  ;;  %v402_v37 = vmax.f32 %v386_v30, 0.0 }
 0x10a   :  { %v840_v27 = vpop.f32.mrf.mxu0 }
 0x10b   :  { %v387_v29 = vadd.f32 %v840_v27, %v701_v26  ;;  %v400_v35 = vmax.f32 %v384_v28, 0.0 }
 0x10c   :  { %v266_v31 = vpop.f32.mrf.mxu0 }
 0x10d   :  { %v385_v32 = vadd.f32 %v701_v26, %v266_v31  ;;  %v403_v33 = vmax.f32 %v387_v29, 0.0 }
 0x10e   :  { %v843_v34 = vpop.f32.mrf.mxu0 }
 0x10f   :  { %v401_v36 = vmax.f32 %v385_v32, 0.0  ;;  %v417_v40 = vpack.c.bf16 %v403_v33, %v402_v37  ;;  %v390_v44 = vadd.f32 %v843_v34, %v701_v26 }
 0x110   :  { %v279_v38 = vpop.f32.mrf.mxu0 }
 0x111   :  { %v416_v39 = vpack.c.bf16 %v401_v36, %v400_v35  ;;  %v388_v42 = vadd.f32 %v701_v26, %v279_v38  ;;  %v406_v51 = vmax.f32 %v390_v44, 0.0 }
 0x112   :  { %v844_v41 = vpop.f32.mrf.mxu0 }
 0x113   :  { %v391_v43 = vadd.f32 %v844_v41, %v701_v26  ;;  %869 = vmatprep.mubr.bf16.mxu1 %v416_v39  ;;  %v404_v49 = vmax.f32 %v388_v42, 0.0 }
 0x114   :  { %v282_v45 = vpop.f32.mrf.mxu0  ;;  %870 = vmatmul.mubr.bf16.vlgmr.msra.gmra.mxu1 %v417_v40 }
 0x115   :  { %v389_v46 = vadd.f32 %v701_v26, %v282_v45  ;;  %v407_v47 = vmax.f32 %v391_v43, 0.0 }
 0x116   :  { %v847_v48 = vpop.f32.mrf.mxu0 }
 0x117   :  { %v405_v50 = vmax.f32 %v389_v46, 0.0  ;;  %v419_v54 = vpack.c.bf16 %v407_v47, %v406_v51  ;;  %v394_v58 = vadd.f32 %v847_v48, %v701_v26 }
 0x118   :  { %v295_v52 = vpop.f32.mrf.mxu0 }
 0x119   :  { %v418_v53 = vpack.c.bf16 %v405_v50, %v404_v49  ;;  %v392_v56 = vadd.f32 %v701_v26, %v295_v52  ;;  %v410_v1 = vmax.f32 %v394_v58, 0.0 }
 0x11a   :  { %v848_v55 = vpop.f32.mrf.mxu0 }
 0x11b   :  { %v395_v57 = vadd.f32 %v848_v55, %v701_v26  ;;  %873 = vmatprep.mubr.bf16.mxu1 %v418_v53  ;;  %v408_v63 = vmax.f32 %v392_v56, 0.0 }
 0x11c   :  { %v298_v59 = vpop.f32.mrf.mxu0  ;;  %874 = vmatmul.mubr.bf16.gmra.mxu1 %v419_v54 }
 0x11d   :  { %v393_v60 = vadd.f32 %v701_v26, %v298_v59  ;;  %v411_v61 = vmax.f32 %v395_v57, 0.0 }
 0x11e   :  { %v851_v62 = vpop.f32.mrf.mxu0 }
 0x11f   :  { %v409_v0 = vmax.f32 %v393_v60, 0.0  ;;  %v421_v4 = vpack.c.bf16 %v411_v61, %v410_v1  ;;  %v398_v8 = vadd.f32 %v851_v62, %v701_v26 }
 0x120   :  { %v311_v2 = vpop.f32.mrf.mxu0 }
 0x121   :  { %v420_v3 = vpack.c.bf16 %v409_v0, %v408_v63  ;;  %v396_v6 = vadd.f32 %v701_v26, %v311_v2  ;;  %v414_v14 = vmax.f32 %v398_v8, 0.0 }
 0x122   :  { %v852_v5 = vpop.f32.mrf.mxu0 }
 0x123   :  { %v399_v7 = vadd.f32 %v852_v5, %v701_v26  ;;  %877 = vmatprep.mubr.bf16.mxu1 %v420_v3  ;;  %v412_v12 = vmax.f32 %v396_v6, 0.0 }
 0x124   :  { %v314_v9 = vpop.f32.mrf.mxu0  ;;  %878 = vmatmul.mubr.bf16.gmra.mxu1 %v421_v4 }
 0x125   :  { %v397_v10 = vadd.f32 %v701_v26, %v314_v9  ;;  %v415_v11 = vmax.f32 %v399_v7, 0.0 }
 0x127   :  { %v413_v13 = vmax.f32 %v397_v10, 0.0  ;;  %v423_v16 = vpack.c.bf16 %v415_v11, %v414_v14 }
 0x129   :  { %v422_v15 = vpack.c.bf16 %v413_v13, %v412_v12 }
 0x12b   :  { %881 = vmatprep.mubr.bf16.mxu1 %v422_v15 }
 0x12c   :  { %882 = vmatmul.mubr.bf16.gmra.mxu1 %v423_v16 }
 0x1d4   :  { %v871_v17 = vpop.f32.mrf.mxu1 }
 0x1d6   :  { %v522_v18 = vpop.f32.mrf.mxu1 }
 0x1d8   :  { %v872_v19 = vpop.f32.mrf.mxu1 }
 0x1d9   :  { %v750_v20 = vpack.c.bf16 %v872_v19, %v871_v17 }
 0x1da   :  { %v525_v21 = vpop.f32.mrf.mxu1 }
 0x1db   :  { %782 = vst [vmem:[#allocation9 + $0x8] sm:$0xff] %v750_v20   ;;  %v745_v22 = vpack.c.bf16 %v525_v21, %v522_v18 }
 0x1dc   :  { %v875_v23 = vpop.f32.mrf.mxu1 }
 0x1dd   :  { %746 = vst [vmem:[#allocation9] sm:$0xff] %v745_v22  }
 0x1de   :  { %v538_v24 = vpop.f32.mrf.mxu1 }
 0x1e0   :  { %v876_v25 = vpop.f32.mrf.mxu1 }
 0x1e1   :  { %v760_v26 = vpack.c.bf16 %v876_v25, %v875_v23 }
 0x1e2   :  { %v541_v27 = vpop.f32.mrf.mxu1 }
 0x1e3   :  { %784 = vst [vmem:[#allocation9 + $0x18] sm:$0xff] %v760_v26   ;;  %v755_v28 = vpack.c.bf16 %v541_v27, %v538_v24 }
 0x1e4   :  { %v879_v29 = vpop.f32.mrf.mxu1 }
 0x1e5   :  { %783 = vst [vmem:[#allocation9 + $0x10] sm:$0xff] %v755_v28  }
 0x1e6   :  { %v554_v30 = vpop.f32.mrf.mxu1 }
 0x1e8   :  { %v880_v31 = vpop.f32.mrf.mxu1 }
 0x1e9   :  { %v770_v32 = vpack.c.bf16 %v880_v31, %v879_v29 }
 0x1ea   :  { %v557_v33 = vpop.f32.mrf.mxu1 }
 0x1eb   :  { %786 = vst [vmem:[#allocation9 + $0x28] sm:$0xff] %v770_v32   ;;  %v765_v34 = vpack.c.bf16 %v557_v33, %v554_v30 }
 0x1ec   :  { %v883_v35 = vpop.f32.mrf.mxu1 }
 0x1ed   :  { %785 = vst [vmem:[#allocation9 + $0x20] sm:$0xff] %v765_v34  }
 0x1ee   :  { %v570_v36 = vpop.f32.mrf.mxu1 }
 0x1f0   :  { %v884_v37 = vpop.f32.mrf.mxu1 }
 0x1f1   :  { %v780_v38 = vpack.c.bf16 %v884_v37, %v883_v35 }
 0x1f2   :  { %v573_v39 = vpop.f32.mrf.mxu1 }
 0x1f3   :  { %788 = vst [vmem:[#allocation9 + $0x38] sm:$0xff] %v780_v38   ;;  %v775_v40 = vpack.c.bf16 %v573_v39, %v570_v36 }
 0x1f5   :  { %787 = vst [vmem:[#allocation9 + $0x30] sm:$0xff] %v775_v40  }
 0x1f6   :  { %986 = shalt.err (!%p983_p5)
}
 0x1f7   :  { %676 = dma.vmem_to_hbm [thread:$0]  %s671_s5, 1024, %s1063_s4, [#allocation5], %s1003_s20, %s1003_s20, %s1004_s21  }
 0x1f8   :  { %999 = dma.done.wait [#allocation5], 1024  }
 0x1f9   :  { %1000 = vsyncadd [#allocation5], 4294966272 }
 0x1fa   :  { %680 = vsyncpa [#allocation4], 1 }
 0x1fb   :  { %681 = vsyncpa [#allocation7], 1 }
 0x1fc   :  { %682 = vsyncpa [#allocation5], 1 }

</bundles_post_ra>
